<compile_context>
chip_gen: v7x
topology: tpu7x:2x2x1
jax: 0.10.0
libtpu: 0.0.40
codegen_flags: <defaults>
</compile_context>

<pallas_src>
import functools
import math

import jax
import jax.numpy as jnp
from jax.experimental import pallas as pl
from jax.experimental.pallas import tpu as pltpu

BN_EPS = 1e-5
LANE = 128
SUBLANE = 8


def _round_up(v, m):
    return ((v + m - 1) // m) * m


def _fused_mlp_kernel(x_ref, w_ref, b_ref, g_ref, beta_ref, o_ref, *,
                      num_layers, m_true):
    # x_ref:    (M_pad, F_pad)            padded input rows
    # w_ref:    (L, F_pad, F_pad)         pre-transposed, zero-padded weights
    # b/g/beta: (L, 1, F_pad)             zero-padded per-feature vectors
    # o_ref:    (M_pad, F_pad)            lane-dense output
    m_pad = x_ref.shape[0]
    inv_m = jnp.float32(1.0 / m_true)
    ones_row = jnp.ones((1, m_pad), jnp.float32)

    # Row-validity mask so zero-padded rows never pollute the batch statistics.
    # (Padded rows pick up the bias after the matmul, so they must be masked.)
    if m_pad != m_true:
        row_ids = jax.lax.broadcasted_iota(jnp.int32, (m_pad, 1), 0)
        row_mask = (row_ids < m_true).astype(jnp.float32)
    else:
        row_mask = None

    h = x_ref[...].astype(jnp.float32)
    for l in range(num_layers):  # static unroll; L is tiny
        w = w_ref[l].astype(jnp.float32)                      # (F_pad, F_pad)
        # Linear (MXU): y = h @ W^T + b  (W stored pre-transposed).
        y = jnp.dot(h, w, preferred_element_type=jnp.float32) + b_ref[l]

        y_m = y if row_mask is None else y * row_mask
        # One-pass batch stats; reductions over rows done on the MXU.
        s1 = jnp.dot(ones_row, y_m, preferred_element_type=jnp.float32)        # (1,F)
        s2 = jnp.dot(ones_row, y_m * y_m, preferred_element_type=jnp.float32)  # (1,F)
        mean = s1 * inv_m
        var = s2 * inv_m - mean * mean

        # Fold BN affine into a single FMA, then ReLU.
        a = g_ref[l] * jax.lax.rsqrt(var + BN_EPS)            # (1, F_pad)
        c = beta_ref[l] - mean * a
        h = jnp.maximum(y * a + c, 0.0)
        # Padded feature columns stay exactly 0 (zero W cols / bias / gamma / beta),
        # so they never leak into later layers.

    o_ref[...] = h.astype(o_ref.dtype)


def init_mlp_params(key, num_features):
    """Deterministic init matching PyTorch nn.Linear defaults; BN gamma=1, beta=0."""
    params = []
    for i in range(1, len(num_features)):
        f_in, f_out = num_features[i - 1], num_features[i]
        key, kw, kb = jax.random.split(key, 3)
        bound = 1.0 / math.sqrt(f_in)
        w = jax.random.uniform(kw, (f_out, f_in), jnp.float32, -bound, bound)
        b = jax.random.uniform(kb, (f_out,), jnp.float32, -bound, bound)
        gamma = jnp.ones((f_out,), jnp.float32)
        beta = jnp.zeros((f_out,), jnp.float32)
        params.append((w, b, gamma, beta))
    return params


def pack_mlp_params(params):
    """One-time packing: pad every feature dim to a common lane-dense width (128
    multiple), pre-transpose the weights to (F_in, F_out), and stack all layers."""
    dims = [params[0][0].shape[1]] + [w.shape[0] for (w, _, _, _) in params]
    f_pad = _round_up(max(dims), LANE)
    num_layers = len(params)

    w_s = jnp.zeros((num_layers, f_pad, f_pad), jnp.float32)
    b_s = jnp.zeros((num_layers, 1, f_pad), jnp.float32)
    g_s = jnp.zeros((num_layers, 1, f_pad), jnp.float32)
    bt_s = jnp.zeros((num_layers, 1, f_pad), jnp.float32)
    for l, (w, b, g, bt) in enumerate(params):
        f_out, f_in = w.shape
        w_s = w_s.at[l, :f_in, :f_out].set(w.T)   # pre-transposed once, not per call
        b_s = b_s.at[l, 0, :f_out].set(b)
        g_s = g_s.at[l, 0, :f_out].set(g)
        bt_s = bt_s.at[l, 0, :f_out].set(bt)
    return w_s, b_s, g_s, bt_s


def mlp_forward(x, packed, num_features):
    """x: (B, N, F0) -> (B, N, F_last). Matches PyTorch MLP.forward (training-mode BN)."""
    w_s, b_s, g_s, bt_s = packed
    num_layers, f_pad, _ = w_s.shape
    f_last = num_features[-1]

    B, N, f0 = x.shape
    m_true = B * N
    m_pad = _round_up(m_true, SUBLANE)

    x2d = x.reshape(m_true, f0)
    x_p = jnp.pad(x2d, ((0, m_pad - m_true), (0, f_pad - f0)))

    kernel = functools.partial(_fused_mlp_kernel,
                               num_layers=num_layers, m_true=m_true)
    out_p = pl.pallas_call(
        kernel,
        out_shape=jax.ShapeDtypeStruct((m_pad, f_pad), x.dtype),
        in_specs=[pl.BlockSpec(memory_space=pltpu.VMEM)] * 5,
        out_specs=pl.BlockSpec(memory_space=pltpu.VMEM),
    )(x_p, w_s, b_s, g_s, bt_s)

    return out_p[:m_true, :f_last].reshape(B, N, f_last)


def mlp_reference(x, params):
    """Pure-JAX reference (two-pass BN, like PyTorch) for sanity checking."""
    B, N, _ = x.shape
    h = x.reshape(B * N, -1)
    for (w, b, gamma, beta) in params:
        y = h @ w.T + b
        mean = jnp.mean(y, axis=0, keepdims=True)
        var = jnp.mean((y - mean) ** 2, axis=0, keepdims=True)
        y = (y - mean) / jnp.sqrt(var + BN_EPS)
        h = jnp.maximum(y * gamma + beta, 0.0)
    return h.reshape(B, N, -1)


if __name__ == "__main__":
    key = jax.random.PRNGKey(0)
    num_features = [4, 32, 16]          # MLP([4, 32, 16]) -> two Linear+BN+ReLU layers
    B, N = 2, 8                         # x: (batch, seq, features)

    key, kx = jax.random.split(key)
    x = jax.random.normal(kx, (B, N, num_features[0]), jnp.float32)
    params = init_mlp_params(key, num_features)
    packed = pack_mlp_params(params)    # one-time: pad / transpose / stack

    out = mlp_forward(x, packed, num_features)
    jax.block_until_ready(out)

    ref = mlp_reference(x, params)
    assert out.shape == (B, N, num_features[-1])
    assert jnp.allclose(out, ref, atol=1e-4, rtol=1e-4), "mismatch vs reference"

    print("KERNEL_OK")
</pallas_src>

<mosaic_0001>
module attributes {stable_mosaic.version = 11 : i64} {
  func.func @_fused_mlp_kernel(%arg0: memref<16x128xf32, #tpu.memory_space<vmem>>, %arg1: memref<2x128x128xf32, #tpu.memory_space<vmem>>, %arg2: memref<2x1x128xf32, #tpu.memory_space<vmem>>, %arg3: memref<2x1x128xf32, #tpu.memory_space<vmem>>, %arg4: memref<2x1x128xf32, #tpu.memory_space<vmem>>, %arg5: memref<16x128xf32, #tpu.memory_space<vmem>>) attributes {dimension_semantics = [], scalar_prefetch = 0 : i64, scratch_operands = 0 : i64, tpu.core_type = #tpu.core_type<tc>} {
    %cst = arith.constant 1.000000e+00 : f32
    %0 = vector.broadcast %cst : f32 to vector<1x16xf32>
    %c0 = arith.constant 0 : index
    %c0_0 = arith.constant 0 : index
    %1 = vector.load %arg0[%c0, %c0_0] : memref<16x128xf32, #tpu.memory_space<vmem>>, vector<16x128xf32>
    %c0_1 = arith.constant 0 : index
    %c0_2 = arith.constant 0 : index
    %c0_3 = arith.constant 0 : index
    %2 = vector.load %arg1[%c0_1, %c0_2, %c0_3] : memref<2x128x128xf32, #tpu.memory_space<vmem>>, vector<1x128x128xf32>
    %3 = vector.shape_cast %2 : vector<1x128x128xf32> to vector<128x128xf32>
    %cst_4 = arith.constant dense<0.000000e+00> : vector<16x128xf32>
    %4 = tpu.matmul %1, %3, %cst_4 {dimension_numbers = #tpu.dot_dimension_numbers<[1], [0], [0], [1], [0, 0, 1, 1], [], []>} : vector<16x128xf32>, vector<128x128xf32>, vector<16x128xf32> -> vector<16x128xf32>
    %c0_5 = arith.constant 0 : index
    %c0_6 = arith.constant 0 : index
    %c0_7 = arith.constant 0 : index
    %5 = vector.load %arg2[%c0_5, %c0_6, %c0_7] : memref<2x1x128xf32, #tpu.memory_space<vmem>>, vector<1x1x128xf32>
    %6 = vector.shape_cast %5 : vector<1x1x128xf32> to vector<1x128xf32>
    %7 = vector.broadcast %6 : vector<1x128xf32> to vector<16x128xf32>
    %8 = arith.addf %4, %7 : vector<16x128xf32>
    %cst_8 = arith.constant dense<0.000000e+00> : vector<1x128xf32>
    %9 = tpu.matmul %0, %8, %cst_8 {dimension_numbers = #tpu.dot_dimension_numbers<[1], [0], [0], [1], [0, 0, 1, 1], [], []>} : vector<1x16xf32>, vector<16x128xf32>, vector<1x128xf32> -> vector<1x128xf32>
    %10 = arith.mulf %8, %8 : vector<16x128xf32>
    %cst_9 = arith.constant dense<0.000000e+00> : vector<1x128xf32>
    %11 = tpu.matmul %0, %10, %cst_9 {dimension_numbers = #tpu.dot_dimension_numbers<[1], [0], [0], [1], [0, 0, 1, 1], [], []>} : vector<1x16xf32>, vector<16x128xf32>, vector<1x128xf32> -> vector<1x128xf32>
    %cst_10 = arith.constant 6.250000e-02 : f32
    %12 = vector.broadcast %cst_10 : f32 to vector<1x128xf32>
    %13 = arith.mulf %9, %12 : vector<1x128xf32>
    %cst_11 = arith.constant 6.250000e-02 : f32
    %14 = vector.broadcast %cst_11 : f32 to vector<1x128xf32>
    %15 = arith.mulf %11, %14 : vector<1x128xf32>
    %16 = arith.mulf %13, %13 : vector<1x128xf32>
    %17 = arith.subf %15, %16 : vector<1x128xf32>
    %c0_12 = arith.constant 0 : index
    %c0_13 = arith.constant 0 : index
    %c0_14 = arith.constant 0 : index
    %18 = vector.load %arg3[%c0_12, %c0_13, %c0_14] : memref<2x1x128xf32, #tpu.memory_space<vmem>>, vector<1x1x128xf32>
    %19 = vector.shape_cast %18 : vector<1x1x128xf32> to vector<1x128xf32>
    %cst_15 = arith.constant 9.99999974E-6 : f32
    %20 = vector.broadcast %cst_15 : f32 to vector<1x128xf32>
    %21 = arith.addf %17, %20 : vector<1x128xf32>
    %22 = math.rsqrt %21 : vector<1x128xf32>
    %23 = arith.mulf %19, %22 : vector<1x128xf32>
    %c0_16 = arith.constant 0 : index
    %c0_17 = arith.constant 0 : index
    %c0_18 = arith.constant 0 : index
    %24 = vector.load %arg4[%c0_16, %c0_17, %c0_18] : memref<2x1x128xf32, #tpu.memory_space<vmem>>, vector<1x1x128xf32>
    %25 = vector.shape_cast %24 : vector<1x1x128xf32> to vector<1x128xf32>
    %26 = arith.mulf %13, %23 : vector<1x128xf32>
    %27 = arith.subf %25, %26 : vector<1x128xf32>
    %28 = vector.broadcast %23 : vector<1x128xf32> to vector<16x128xf32>
    %29 = arith.mulf %8, %28 : vector<16x128xf32>
    %30 = vector.broadcast %27 : vector<1x128xf32> to vector<16x128xf32>
    %31 = arith.addf %29, %30 : vector<16x128xf32>
    %cst_19 = arith.constant 0.000000e+00 : f32
    %32 = vector.broadcast %cst_19 : f32 to vector<16x128xf32>
    %33 = arith.maximumf %31, %32 : vector<16x128xf32>
    %c1 = arith.constant 1 : index
    %c0_20 = arith.constant 0 : index
    %c0_21 = arith.constant 0 : index
    %34 = vector.load %arg1[%c1, %c0_20, %c0_21] : memref<2x128x128xf32, #tpu.memory_space<vmem>>, vector<1x128x128xf32>
    %35 = vector.shape_cast %34 : vector<1x128x128xf32> to vector<128x128xf32>
    %cst_22 = arith.constant dense<0.000000e+00> : vector<16x128xf32>
    %36 = tpu.matmul %33, %35, %cst_22 {dimension_numbers = #tpu.dot_dimension_numbers<[1], [0], [0], [1], [0, 0, 1, 1], [], []>} : vector<16x128xf32>, vector<128x128xf32>, vector<16x128xf32> -> vector<16x128xf32>
    %c1_23 = arith.constant 1 : index
    %c0_24 = arith.constant 0 : index
    %c0_25 = arith.constant 0 : index
    %37 = vector.load %arg2[%c1_23, %c0_24, %c0_25] : memref<2x1x128xf32, #tpu.memory_space<vmem>>, vector<1x1x128xf32>
    %38 = vector.shape_cast %37 : vector<1x1x128xf32> to vector<1x128xf32>
    %39 = vector.broadcast %38 : vector<1x128xf32> to vector<16x128xf32>
    %40 = arith.addf %36, %39 : vector<16x128xf32>
    %cst_26 = arith.constant dense<0.000000e+00> : vector<1x128xf32>
    %41 = tpu.matmul %0, %40, %cst_26 {dimension_numbers = #tpu.dot_dimension_numbers<[1], [0], [0], [1], [0, 0, 1, 1], [], []>} : vector<1x16xf32>, vector<16x128xf32>, vector<1x128xf32> -> vector<1x128xf32>
    %42 = arith.mulf %40, %40 : vector<16x128xf32>
    %cst_27 = arith.constant dense<0.000000e+00> : vector<1x128xf32>
    %43 = tpu.matmul %0, %42, %cst_27 {dimension_numbers = #tpu.dot_dimension_numbers<[1], [0], [0], [1], [0, 0, 1, 1], [], []>} : vector<1x16xf32>, vector<16x128xf32>, vector<1x128xf32> -> vector<1x128xf32>
    %cst_28 = arith.constant 6.250000e-02 : f32
    %44 = vector.broadcast %cst_28 : f32 to vector<1x128xf32>
    %45 = arith.mulf %41, %44 : vector<1x128xf32>
    %cst_29 = arith.constant 6.250000e-02 : f32
    %46 = vector.broadcast %cst_29 : f32 to vector<1x128xf32>
    %47 = arith.mulf %43, %46 : vector<1x128xf32>
    %48 = arith.mulf %45, %45 : vector<1x128xf32>
    %49 = arith.subf %47, %48 : vector<1x128xf32>
    %c1_30 = arith.constant 1 : index
    %c0_31 = arith.constant 0 : index
    %c0_32 = arith.constant 0 : index
    %50 = vector.load %arg3[%c1_30, %c0_31, %c0_32] : memref<2x1x128xf32, #tpu.memory_space<vmem>>, vector<1x1x128xf32>
    %51 = vector.shape_cast %50 : vector<1x1x128xf32> to vector<1x128xf32>
    %cst_33 = arith.constant 9.99999974E-6 : f32
    %52 = vector.broadcast %cst_33 : f32 to vector<1x128xf32>
    %53 = arith.addf %49, %52 : vector<1x128xf32>
    %54 = math.rsqrt %53 : vector<1x128xf32>
    %55 = arith.mulf %51, %54 : vector<1x128xf32>
    %c1_34 = arith.constant 1 : index
    %c0_35 = arith.constant 0 : index
    %c0_36 = arith.constant 0 : index
    %56 = vector.load %arg4[%c1_34, %c0_35, %c0_36] : memref<2x1x128xf32, #tpu.memory_space<vmem>>, vector<1x1x128xf32>
    %57 = vector.shape_cast %56 : vector<1x1x128xf32> to vector<1x128xf32>
    %58 = arith.mulf %45, %55 : vector<1x128xf32>
    %59 = arith.subf %57, %58 : vector<1x128xf32>
    %60 = vector.broadcast %55 : vector<1x128xf32> to vector<16x128xf32>
    %61 = arith.mulf %40, %60 : vector<16x128xf32>
    %62 = vector.broadcast %59 : vector<1x128xf32> to vector<16x128xf32>
    %63 = arith.addf %61, %62 : vector<16x128xf32>
    %cst_37 = arith.constant 0.000000e+00 : f32
    %64 = vector.broadcast %cst_37 : f32 to vector<16x128xf32>
    %65 = arith.maximumf %63, %64 : vector<16x128xf32>
    %c0_38 = arith.constant 0 : index
    %c0_39 = arith.constant 0 : index
    %66 = vector.load %arg5[%c0_38, %c0_39] : memref<16x128xf32, #tpu.memory_space<vmem>>, vector<16x128xf32>
    tpu.vector_store %arg5[%c0_38, %c0_39], %65 {strides = array<i32>} : memref<16x128xf32, #tpu.memory_space<vmem>>, vector<16x128xf32>,
    return
  }
}

</mosaic_0001>

<bundles_post_ra>
// kernel: tpu_custom_call.1
= control target key start
LH: loop header
LB: loop body
LE: loop exit
PB: predicated region body
PF: predicated region fallthrough
CT: control target
= control target key end

     0   :  { %10 = vsyncpa [#allocation3], 0  ;;  %s1067_s0 = inlined_call_operand.hbm [shape: f32[16,128], index: 0, kind: input, shape index: {}]   ;;  %s1068_s1 = inlined_call_operand.hbm [shape: f32[2,128,128], index: 1, kind: input, shape index: {}]   ;;  %s1069_s2 = inlined_call_operand.vmem [shape: f32[2,1,128], index: 2, kind: input, shape index: {}]   ;;  %s1070_s3 = inlined_call_operand.vmem [shape: f32[2,1,128], index: 3, kind: input, shape index: {}]   ;;  %s1071_s4 = inlined_call_operand.vmem [shape: f32[2,1,128], index: 4, kind: input, shape index: {}]   ;;  %s1072_s5 = inlined_call_operand.hbm [shape: f32[16,128], index: 5, kind: output, shape index: {}]  }
   0x1   :  { %11 = vsyncpa [#allocation6], 0 }
   0x2   :  { %12 = vsyncpa [#allocation4], 0  ;;  %s933_s18 = smov [#allocation2]   ;;  %s861_s22 = scalar_lea.hbm %s1067_s0, 256 }
   0x3   :  { %s18_s19 = sshll.u32 %s933_s18, 4  ;;  %p862_p0 = scmp.ne.s32.totalorder %s1067_s0, %s861_s22  ;;  %s19_s19 = int_to_ptr.vmem [resolvable:$true] %s18_s19 }
   0x4   :  { %p865_p1 = scmp.lt.u32.totalorder %s861_s22, %s1067_s0 }
   0x6   :  { %p867_p2 = pnand %p865_p1, %p862_p0 }
   0x8   :  { %870 = shalt.err (!%p867_p2)
}
   0x9   :  { %s871_s27 = scalar_lea.vmem %s19_s19, 256  ;;  %p876_p4 = scmp.lt.s32.totalorder %s19_s19, %s19_s19 }
   0xa   :  { %p872_p3 = scmp.ne.s32.totalorder %s19_s19, %s871_s27  ;;  %p877_p5 = scmp.lt.s32.totalorder %s871_s27, %s871_s27 }
   0xc   :  { %p878_p6 = por %p877_p5, %p876_p4 }
   0xe   :  { %p879_p7 = pnand %p878_p6, %p872_p3 }
  0x10   :  { %882 = shalt.err (!%p879_p7)
}
  0x11   :  { %s934_s28 = smov 128   ;;  %s935_s29 = smov 8  }
  0x12   :  { %24 = dma.hbm_to_vmem [thread:$0]  %s1067_s0, 256, %s19_s19, [#allocation3], %s934_s28, %s934_s28, %s935_s29  }
  0x13   :  { %s936_s7 = smov [#allocation5]   ;;  %s883_s11 = scalar_lea.hbm %s1068_s1, 4096 }
  0x14   :  { %s30_s8 = sshll.u32 %s936_s7, 4  ;;  %p884_p8 = scmp.ne.s32.totalorder %s1068_s1, %s883_s11  ;;  %s31_s8 = int_to_ptr.vmem [resolvable:$true] %s30_s8 }
  0x15   :  { %p887_p9 = scmp.lt.u32.totalorder %s883_s11, %s1068_s1 }
  0x17   :  { %p889_p10 = pnand %p887_p9, %p884_p8 }
  0x19   :  { %892 = shalt.err (!%p889_p10)
}
  0x1a   :  { %s893_s16 = scalar_lea.vmem %s31_s8, 4096  ;;  %p898_p12 = scmp.lt.s32.totalorder %s31_s8, %s31_s8 }
  0x1b   :  { %p894_p11 = scmp.ne.s32.totalorder %s31_s8, %s893_s16  ;;  %p899_p13 = scmp.lt.s32.totalorder %s893_s16, %s893_s16 }
  0x1d   :  { %p900_p0 = por %p899_p13, %p898_p12 }
  0x1f   :  { %p901_p1 = pnand %p900_p0, %p894_p11 }
  0x21   :  { %904 = shalt.err (!%p901_p1)
}
  0x22   :  { %36 = dma.hbm_to_vmem [thread:$0]  %s1068_s1, 4096, %s31_s8, [#allocation6], %s934_s28, %s934_s28, %s935_s29  }
  0x23   :  { %927 = dma.done.wait [#allocation3], 256  }
  0x24   :  { %928 = vsyncadd [#allocation3], 4294967040 }
  0x25   :  { %929 = dma.done.wait [#allocation6], 4096  }
  0x26   :  { %930 = vsyncadd [#allocation6], 4294963200  ;;  %v51_v0 = vld [vmem:[#allocation5] sm:$0xff]  ;;  %v52_v1 = vld [vmem:[#allocation5 + $0x8] sm:$0xff]  ;;  %v937_v26 = vmov 0.0|0.0   ;;  %vm938_vm0 = vmmov 0  }
  0x27   :  { %v53_v2 = vld [vmem:[#allocation5 + $0x10] sm:$0xff]  ;;  %v772_v3 = vpack.c.bf16 %v52_v1, %v51_v0  ;;  %v54_v4 = vld [vmem:[#allocation5 + $0x18] sm:$0xff]  ;;  %v55_v6 = vld [vmem:[#allocation5 + $0x20] sm:$0xff]  ;;  %804 = vmatprep.subr.bf16.mxu1 %v937_v26  ;;  %v939_v27 = vmov 0.0   ;;  %vm149_vm1 = vcmask 130048   ;;  %v940_v37 = vmov 1.0  }
  0x28   :  { %v776_v5 = vpack.c.bf16 %v54_v4, %v53_v2  ;;  %v56_v7 = vld [vmem:[#allocation5 + $0x28] sm:$0xff]  ;;  %v49_v9 = vld [vmem:[#allocation2] sm:$0xff]  ;;  %v58_v11 = vld [vmem:[#allocation5 + $0x38] sm:$0xff]  ;;  %713 = vmatprep.mubr.msk.f32.mxu1 %vm938_vm0, %v939_v27  ;;  %s941_s30 = smov [#allocation7]  }
  0x29   :  { %773 = vmatprep.subr.bf16.mxu0 %v772_v3  ;;  %v780_v8 = vpack.c.bf16 %v56_v7, %v55_v6  ;;  %v57_v10 = vld [vmem:[#allocation5 + $0x30] sm:$0xff]  ;;  %706 = vmatprep.mubr.f32.mxu0 %v49_v9  ;;  %v59_v13 = vld [vmem:[#allocation5 + $0x40] sm:$0xff]  ;;  %v60_v14 = vld [vmem:[#allocation5 + $0x48] sm:$0xff]  ;;  %v307_v7 = vlaneseq  ;;  %s604_s6 = sshll.u32 %s941_s30, 4  ;;  %s605_s6 = int_to_ptr.vmem [resolvable:$true] %s604_s6 }
  0x2a   :  { %775 = vmatpush3.bf16.msra.mxu0 %v772_v3  ;;  %v784_v12 = vpack.c.bf16 %v58_v11, %v57_v10  ;;  %v788_v15 = vpack.c.bf16 %v60_v14, %v59_v13  ;;  %v61_v16 = vld [vmem:[#allocation5 + $0x50] sm:$0xff]  ;;  %v62_v17 = vld [vmem:[#allocation5 + $0x58] sm:$0xff]  ;;  %v63_v19 = vld [vmem:[#allocation5 + $0x60] sm:$0xff]  ;;  %p910_p3 = scmp.lt.s32.totalorder %s605_s6, %s605_s6 }
  0x2b   :  { %777 = vmatprep.subr.bf16.mxu0 %v776_v5  ;;  %v792_v18 = vpack.c.bf16 %v62_v17, %v61_v16  ;;  %v64_v20 = vld [vmem:[#allocation5 + $0x68] sm:$0xff]  ;;  %v65_v22 = vld [vmem:[#allocation5 + $0x70] sm:$0xff]  ;;  %v66_v23 = vld [vmem:[#allocation5 + $0x78] sm:$0xff] }
  0x2c   :  { %v796_v21 = vpack.c.bf16 %v64_v20, %v63_v19  ;;  %v800_v24 = vpack.c.bf16 %v66_v23, %v65_v22  ;;  %v50_v25 = vld [vmem:[#allocation2 + $0x8] sm:$0xff]  ;;  %v617_v28 = vld [vmem:[%s1069_s2] ss:$0 sm:$0xff]  ;;  %v325_v38 = vld [vmem:[#allocation5 + $0x80] sm:$0xff] }
  0x2d   :  { %v326_v39 = vld [vmem:[#allocation5 + $0x88] sm:$0xff]  ;;  %v327_v41 = vld [vmem:[#allocation5 + $0x90] sm:$0xff]  ;;  %v328_v42 = vld [vmem:[#allocation5 + $0x98] sm:$0xff] }
  0x2e   :  { %779 = vmatpush3.bf16.msra.mxu0 %v776_v5  ;;  %v810_v40 = vpack.c.bf16 %v326_v39, %v325_v38  ;;  %v814_v43 = vpack.c.bf16 %v328_v42, %v327_v41  ;;  %v329_v44 = vld [vmem:[#allocation5 + $0xa0] sm:$0xff]  ;;  %v330_v45 = vld [vmem:[#allocation5 + $0xa8] sm:$0xff]  ;;  %v331_v47 = vld [vmem:[#allocation5 + $0xb0] sm:$0xff] }
  0x2f   :  { %781 = vmatprep.subr.bf16.mxu0 %v780_v8  ;;  %v818_v46 = vpack.c.bf16 %v330_v45, %v329_v44  ;;  %v332_v48 = vld [vmem:[#allocation5 + $0xb8] sm:$0xff]  ;;  %v333_v49 = vld [vmem:[#allocation5 + $0xc0] sm:$0xff]  ;;  %v334_v51 = vld [vmem:[#allocation5 + $0xc8] sm:$0xff] }
  0x30   :  { %v822_v50 = vpack.c.bf16 %v332_v48, %v331_v47  ;;  %v826_v52 = vpack.c.bf16 %v334_v51, %v333_v49  ;;  %v335_v53 = vld [vmem:[#allocation5 + $0xd0] sm:$0xff]  ;;  %v336_v54 = vld [vmem:[#allocation5 + $0xd8] sm:$0xff]  ;;  %v337_v56 = vld [vmem:[#allocation5 + $0xe0] sm:$0xff] }
  0x31   :  { %v830_v55 = vpack.c.bf16 %v336_v54, %v335_v53  ;;  %v338_v57 = vld [vmem:[#allocation5 + $0xe8] sm:$0xff]  ;;  %v339_v59 = vld [vmem:[#allocation5 + $0xf0] sm:$0xff]  ;;  %v340_v60 = vld [vmem:[#allocation5 + $0xf8] sm:$0xff] }
  0x32   :  { %783 = vmatpush3.bf16.msra.mxu0 %v780_v8  ;;  %v834_v58 = vpack.c.bf16 %v338_v57, %v337_v56  ;;  %v838_v61 = vpack.c.bf16 %v340_v60, %v339_v59  ;;  %v308_v8 = vshrl.u32 %v307_v7, 7  ;;  %v299_v9 = vld [vmem:[%s1070_s3] sm:$0x1]  ;;  %v624_v44 = vld [vmem:[%s1070_s3 + $0x1] sm:$0x1]  ;;  %s905_s3 = scalar_lea.vmem %s605_s6, 256 }
  0x33   :  { %785 = vmatprep.subr.bf16.mxu0 %v784_v12  ;;  %v303_v13 = vld [vmem:[%s1071_s4] sm:$0x1]  ;;  %p906_p2 = scmp.ne.s32.totalorder %s605_s6, %s905_s3  ;;  %p911_p4 = scmp.lt.s32.totalorder %s905_s3, %s905_s3 }
  0x34   :  { %v309_v10 = vsub.s32 0, %v308_v8 }
  0x35   :  { %p912_p5 = por %p911_p4, %p910_p3 }
  0x36   :  { %787 = vmatpush3.bf16.msra.mxu0 %v784_v12 }
  0x37   :  { %789 = vmatprep.subr.bf16.mxu0 %v788_v15  ;;  %p913_p6 = pnand %p912_p5, %p906_p2 }
  0x3a   :  { %791 = vmatpush3.bf16.msra.mxu0 %v788_v15 }
  0x3b   :  { %793 = vmatprep.subr.bf16.mxu0 %v792_v18 }
  0x3e   :  { %795 = vmatpush3.bf16.msra.mxu0 %v792_v18 }
  0x3f   :  { %797 = vmatprep.subr.bf16.mxu0 %v796_v21 }
  0x42   :  { %799 = vmatpush3.bf16.msra.mxu0 %v796_v21 }
  0x43   :  { %801 = vmatprep.subr.bf16.mxu0 %v800_v24 }
  0x46   :  { %803 = vmatpush3.bf16.msra.mxu0 %v800_v24  ;;  %v621_v24 = vld [vmem:[%s1069_s2 + $0x1] ss:$0 sm:$0xff] }
  0x47   :  { %842 = vmatprep.subr.bf16.mxu0 %v937_v26 }
  0x49   :  { %707 = vmatmul.mubr.f32.vlgmr.msra.gmra.mrb[0].mxu0 %v50_v25 }
  0x4a   :  { %762 = vmatprep.mubr.msk.f32.mxu0 %vm938_vm0, %v939_v27 }
 0x11c   :  { %v708_v29 = vpop.f32.mrb[0].mxu0 }
 0x11d   :  { %v1011_v30 = vadd.f32 %v708_v29, %v617_v28  ;;  %v140_v31 = vpop.f32.mrb[1].mxu0 }
 0x11e   :  { %v1013_v32 = vadd.f32 %v617_v28, %v140_v31 }
 0x11f   :  { %v224_v33 = vmul.f32 %v1011_v30, %v1011_v30 }
 0x120   :  { %v223_v34 = vmul.f32 %v1013_v32, %v1013_v32  ;;  %v805_v35 = vpack.c.bf16 %v1011_v30, %v1013_v32 }
 0x122   :  { %806 = vmatpush3.bf16.msra.mxu1 %v805_v35  ;;  %v808_v36 = vpack.c.bf16 %v224_v33, %v223_v34 }
 0x123   :  { %807 = vmatprep.subr.bf16.mxu1 %v937_v26 }
 0x125   :  { %714 = vmatmul.mubr.msk.f32.vlgmr.msra.gmra.mrb[0].mxu1 %vm149_vm1, %v940_v37 }
 0x126   :  { %809 = vmatpush3.bf16.msra.mxu1 %v808_v36  ;;  %720 = vmatprep.mubr.msk.f32.mxu1 %vm938_vm0, %v939_v27 }
 0x127   :  { %811 = vmatprep.subr.bf16.mxu1 %v810_v40 }
 0x129   :  { %721 = vmatmul.mubr.msk.f32.vlgmr.msra.gmra.mrb[2].mxu1 %vm149_vm1, %v940_v37 }
 0x12a   :  { %813 = vmatpush3.bf16.msra.mxu1 %v810_v40 }
 0x12b   :  { %815 = vmatprep.subr.bf16.mxu1 %v814_v43 }
 0x12e   :  { %817 = vmatpush3.bf16.msra.mxu1 %v814_v43 }
 0x12f   :  { %819 = vmatprep.subr.bf16.mxu1 %v818_v46 }
 0x132   :  { %821 = vmatpush3.bf16.msra.mxu1 %v818_v46 }
 0x133   :  { %823 = vmatprep.subr.bf16.mxu1 %v822_v50 }
 0x136   :  { %825 = vmatpush3.bf16.msra.mxu1 %v822_v50 }
 0x137   :  { %827 = vmatprep.subr.bf16.mxu1 %v826_v52 }
 0x13a   :  { %829 = vmatpush3.bf16.msra.mxu1 %v826_v52 }
 0x13b   :  { %831 = vmatprep.subr.bf16.mxu1 %v830_v55 }
 0x13e   :  { %833 = vmatpush3.bf16.msra.mxu1 %v830_v55 }
 0x13f   :  { %835 = vmatprep.subr.bf16.mxu1 %v834_v58 }
 0x142   :  { %837 = vmatpush3.bf16.msra.mxu1 %v834_v58 }
 0x143   :  { %839 = vmatprep.subr.bf16.mxu1 %v838_v61 }
 0x146   :  { %841 = vmatpush3.bf16.msra.mxu1 %v838_v61 }
 0x1f8   :  { %v219_v62 = vpop.f32.mrb[0].mxu1 }
 0x1f9   :  { %v295_v63 = vmul.f32 0.0625, %v219_v62  ;;  %v715_v0 = vpop.f32.mrb[1].mxu1 }
 0x1fb   :  { %v297_v2 = vmul.f32 %v295_v63, %v295_v63 }
 0x1fc   :  { %v291_v1 = vpop.f32.mrb[2].mxu1 }
 0x1fd   :  { %v296_v3 = vmul.f32 0.0625, %v291_v1  ;;  %v722_v4 = vpop.f32.mrb[3].mxu1 }
 0x1ff   :  { %v298_v5 = vsub.f32 %v296_v3, %v297_v2 }
 0x201   :  { %v300_v6 = vadd.f32 1e-05, %v298_v5 }
 0x203   :  { %857 = vrsqrt.f32 %v300_v6 }
 0x20d   :  { %v858_v11 = vpop.eup %857 }
 0x20e   :  { %v302_v12 = vmul.f32 %v858_v11, %v299_v9 }
 0x210   :  { %v304_v14 = vmul.f32 %v302_v12, %v295_v63  ;;  %v310_v15 = vrot.slane %v302_v12, %v309_v10 }
 0x212   :  { %v305_v16 = vsub.f32 %v303_v13, %v304_v14  ;;  %v312_v17 = vmul.f32 %v310_v15, %v1013_v32  ;;  %v313_v19 = vmul.f32 %v310_v15, %v1011_v30 }
 0x214   :  { %v318_v18 = vrot.slane %v305_v16, %v309_v10 }
 0x216   :  { %v320_v20 = vadd.f32 %v318_v18, %v312_v17  ;;  %v321_v21 = vadd.f32 %v318_v18, %v313_v19 }
 0x218   :  { %v322_v22 = vmax.f32 %v320_v20, 0.0  ;;  %v323_v23 = vmax.f32 %v321_v21, 0.0 }
 0x21a   :  { %755 = vmatprep.mubr.f32.mxu1 %v322_v22 }
 0x21b   :  { %756 = vmatmul.mubr.f32.vlgmr.msra.gmra.mrb[4].mxu1 %v323_v23 }
 0x2ee   :  { %v757_v25 = vpop.f32.mrb[4].mxu1 }
 0x2ef   :  { %v421_v28 = vadd.f32 %v757_v25, %v621_v24  ;;  %v415_v29 = vpop.f32.mrb[5].mxu1 }
 0x2f0   :  { %v416_v31 = vadd.f32 %v621_v24, %v415_v29 }
 0x2f1   :  { %v495_v33 = vmul.f32 %v421_v28, %v421_v28 }
 0x2f2   :  { %v843_v34 = vpack.c.bf16 %v421_v28, %v416_v31  ;;  %v494_v32 = vmul.f32 %v416_v31, %v416_v31 }
 0x2f4   :  { %844 = vmatpush3.bf16.msra.mxu0 %v843_v34  ;;  %v846_v30 = vpack.c.bf16 %v495_v33, %v494_v32 }
 0x2f5   :  { %845 = vmatprep.subr.bf16.mxu0 %v937_v26 }
 0x2f7   :  { %763 = vmatmul.mubr.msk.f32.vlgmr.msra.gmra.mrb[2].mxu0 %vm149_vm1, %v940_v37 }
 0x2f8   :  { %847 = vmatpush3.bf16.msra.mxu0 %v846_v30  ;;  %769 = vmatprep.mubr.msk.f32.mxu0 %vm938_vm0, %v939_v27  ;;  %v625_v27 = vld [vmem:[%s1071_s4 + $0x1] sm:$0x1] }
 0x2fb   :  { %770 = vmatmul.mubr.msk.f32.vlgmr.msra.gmra.mrb[4].mxu0 %vm149_vm1, %v940_v37 }
 0x3ca   :  { %v490_v35 = vpop.f32.mrb[2].mxu0 }
 0x3cb   :  { %v566_v36 = vmul.f32 0.0625, %v490_v35  ;;  %v764_v38 = vpop.f32.mrb[3].mxu0 }
 0x3cd   :  { %v568_v40 = vmul.f32 %v566_v36, %v566_v36 }
 0x3ce   :  { %v562_v39 = vpop.f32.mrb[4].mxu0 }
 0x3cf   :  { %v567_v41 = vmul.f32 0.0625, %v562_v39  ;;  %v771_v42 = vpop.f32.mrb[5].mxu0 }
 0x3d1   :  { %v569_v43 = vsub.f32 %v567_v41, %v568_v40 }
 0x3d3   :  { %v572_v26 = vadd.f32 1e-05, %v569_v43 }
 0x3d5   :  { %859 = vrsqrt.f32 %v572_v26 }
 0x3df   :  { %v860_v45 = vpop.eup %859 }
 0x3e0   :  { %v574_v46 = vmul.f32 %v860_v45, %v624_v44 }
 0x3e2   :  { %v577_v37 = vmul.f32 %v574_v46, %v566_v36  ;;  %v583_v47 = vrot.slane %v574_v46, %v309_v10 }
 0x3e4   :  { %v578_v48 = vsub.f32 %v625_v27, %v577_v37  ;;  %v585_v49 = vmul.f32 %v583_v47, %v416_v31  ;;  %v586_v50 = vmul.f32 %v583_v47, %v421_v28 }
 0x3e6   :  { %v591_v51 = vrot.slane %v578_v48, %v309_v10 }
 0x3e8   :  { %v593_v52 = vadd.f32 %v591_v51, %v585_v49  ;;  %v594_v53 = vadd.f32 %v591_v51, %v586_v50 }
 0x3ea   :  { %v595_v54 = vmax.f32 %v593_v52, 0.0  ;;  %v596_v55 = vmax.f32 %v594_v53, 0.0 }
 0x3ec   :  { %597 = vst [vmem:[#allocation7] sm:$0xff] %v595_v54  ;;  %598 = vst [vmem:[#allocation7 + $0x8] sm:$0xff] %v596_v55 }
 0x3ed   :  { %916 = shalt.err (!%p913_p6)
}
 0x3ee   :  { %s917_s8 = scalar_lea.hbm %s1072_s5, 256 }
 0x3ef   :  { %p918_p7 = scmp.ne.s32.totalorder %s1072_s5, %s917_s8  ;;  %p921_p8 = scmp.lt.u32.totalorder %s917_s8, %s1072_s5 }
 0x3f1   :  { %p923_p9 = pnand %p921_p8, %p918_p7 }
 0x3f3   :  { %926 = shalt.err (!%p923_p9)
}
 0x3f4   :  { %610 = dma.vmem_to_hbm [thread:$0]  %s605_s6, 256, %s1072_s5, [#allocation4], %s934_s28, %s934_s28, %s935_s29  }
 0x3f5   :  { %931 = dma.done.wait [#allocation4], 256  }
 0x3f6   :  { %932 = vsyncadd [#allocation4], 4294967040 }
 0x3f7   :  { %614 = vsyncpa [#allocation3], 1 }
 0x3f8   :  { %615 = vsyncpa [#allocation6], 1 }
 0x3f9   :  { %616 = vsyncpa [#allocation4], 1 }

</bundles_post_ra>
